<compile_context>
chip_gen: v5e
topology: v5e:2x2
jax: 0.10.0
libtpu: 0.0.40
codegen_flags: <defaults>
</compile_context>

<pallas_src>
import math
import functools

import jax
import jax.numpy as jnp
from jax.experimental import pallas as pl
from jax.experimental.pallas import tpu as pltpu

_HALF_PI = math.pi / 2.0

_BLOCK_BYTES_TARGET = 4 << 20      # ~4 MiB output block per grid step (review: 2-4 MiB)
_VMEM_LIMIT_BYTES = 32 << 20       # explicit scoped-VMEM limit (raises v5e's 16 MiB default)
_PALLAS_MIN_N = 2048               # below this, fused XLA beats pallas_call launch cost


# ----------------------------- tiling helpers ------------------------------ #

def _round_up(x, m):
    return ((x + m - 1) // m) * m


def _pick_rows(total_rows, out_row_bytes):
    """Largest sublane-aligned row tile whose output block is ~_BLOCK_BYTES_TARGET."""
    r = max(8, _BLOCK_BYTES_TARGET // max(out_row_bytes, 1))
    r = min(r, total_rows)
    return max(8, (r // 8) * 8)


def _pack_params(size):
    """Lane-dense packing: PACK = L // size positions per L-lane output row."""
    if size % 128 == 0:
        return None                      # plain (bn, size) block is already lane-dense
    L = (size * 128) // math.gcd(size, 128)
    pack = L // size
    if pack <= 32 and L <= 1024:
        return L, pack
    # TODO(synk): very narrow sizes (pack > 32) fall back to lane-sparse blocks.
    return None


def _compiler_params():
    return pltpu.CompilerParams(
        dimension_semantics=("parallel",),
        vmem_limit_bytes=_VMEM_LIMIT_BYTES,
    )


# ----------------------------- kernels ------------------------------------- #

def _sin_packed_kernel(xp_ref, fG_ref, ph_ref, out_ref, *, pack):
    # xp_ref: (br, pack) positions; fG_ref: (pack, L) group-masked scaled freqs;
    # ph_ref: (1, L) phase (0 on sin lanes, pi/2 on cos lanes); out_ref: (br, L).
    # Lane-group broadcast via exact f32 multiply-accumulate on the VPU (which has
    # slack; the kernel is EUP/store bound), then ONE full-lane sin and ONE
    # unmasked full-lane store.
    ang = xp_ref[:, 0:1] * fG_ref[0:1, :]
    for g in range(1, pack):
        ang = ang + xp_ref[:, g:g + 1] * fG_ref[g:g + 1, :]
    out_ref[...] = jnp.sin(ang + ph_ref[...])


def _sin_plain_kernel(x_ref, f_ref, ph_ref, out_ref):
    # x_ref: (bn, 1); f_ref / ph_ref: (1, size); out_ref: (bn, size).
    # Single merged store; sin/cos halves fused via the pi/2 phase table.
    out_ref[...] = jnp.sin(x_ref[...] * f_ref[...] + ph_ref[...])


def _affine_packed_kernel(xp_ref, wG_ref, b_ref, out_ref, *, pack):
    # Lane-dense learnable path: out[:, c] = x[group(c)] * (w[c%size]/size) + b[c%size]
    acc = xp_ref[:, 0:1] * wG_ref[0:1, :]
    for g in range(1, pack):
        acc = acc + xp_ref[:, g:g + 1] * wG_ref[g:g + 1, :]
    out_ref[...] = acc + b_ref[...]


def _affine_plain_kernel(x_ref, w_ref, b_ref, out_ref):
    out_ref[...] = x_ref[...] * w_ref[...] + b_ref[...]


# ----------------------------- pallas drivers ------------------------------- #

def _run_packed(kernel, x, tabA, tabB, size, L, pack):
    """Lane-dense driver: pack `pack` positions per L-lane output row."""
    n = x.shape[0]
    xf = x.astype(jnp.float32)
    n_pad = _round_up(max(n, 1), pack * 8)         # rows become a multiple of 8
    if n_pad != n:
        xf = jnp.pad(xf, (0, n_pad - n))
    rows = n_pad // pack
    xp = xf.reshape(rows, pack)
    br = _pick_rows(rows, out_row_bytes=4 * L)
    out = pl.pallas_call(
        functools.partial(kernel, pack=pack),
        out_shape=jax.ShapeDtypeStruct((rows, L), jnp.float32),
        grid=(pl.cdiv(rows, br),),
        in_specs=[
            pl.BlockSpec((br, pack), lambda i: (i, 0)),
            pl.BlockSpec((pack, L), lambda i: (0, 0)),
            pl.BlockSpec((1, L), lambda i: (0, 0)),
        ],
        out_specs=pl.BlockSpec((br, L), lambda i: (i, 0)),
        compiler_params=_compiler_params(),
    )(xp, tabA, tabB)
    out = out.reshape(n_pad, size)   # row-major, bit-identical view of the lane-dense slab
    return out if n_pad == n else out[:n]


def _run_plain(kernel, x, tabA, tabB, size):
    """Fallback driver for sizes that are multiples of 128 (already lane-dense)
    or odd sizes that do not pack nicely."""
    n = x.shape[0]
    xf = x.astype(jnp.float32)
    n_pad = _round_up(max(n, 1), 8)
    if n_pad != n:
        xf = jnp.pad(xf, (0, n_pad - n))
    x2 = xf.reshape(n_pad, 1)
    bn = _pick_rows(n_pad, out_row_bytes=4 * size)
    out = pl.pallas_call(
        kernel,
        out_shape=jax.ShapeDtypeStruct((n_pad, size), jnp.float32),
        grid=(pl.cdiv(n_pad, bn),),
        in_specs=[
            pl.BlockSpec((bn, 1), lambda i: (i, 0)),
            pl.BlockSpec((1, size), lambda i: (0, 0)),
            pl.BlockSpec((1, size), lambda i: (0, 0)),
        ],
        out_specs=pl.BlockSpec((bn, size), lambda i: (i, 0)),
        compiler_params=_compiler_params(),
    )(x2, tabA, tabB)
    return out if n_pad == n else out[:n]


# ----------------------------- module --------------------------------------- #

class PositionalEmbedding:
    """JAX/Pallas port of the PyTorch PositionalEmbedding dispatcher."""

    def __init__(self, size, type, scale=1.0, key=None, min_pallas_n=_PALLAS_MIN_N):
        self.size = size
        self.type = type
        self.scale = float(scale)
        self.min_pallas_n = min_pallas_n

        if type == "sinusoidal":
            if size % 2 != 0:
                raise ValueError("sinusoidal embedding needs an even size")
            half = size // 2
            # NOTE: PyTorch divides by (half-1); for size==2 that is 0 and yields NaN.
            # We guard with max(half-1, 1) (documented divergence from the reference).
            denom = max(half - 1, 1)
            emb = math.log(10000.0) / denom
            freqs = jnp.exp(-emb * jnp.arange(half, dtype=jnp.float32))
            self.freqs_scaled = (freqs * self.scale).astype(jnp.float32)       # (half,)
            col_local = jnp.arange(size)
            lane_f = self.freqs_scaled[col_local % half]                        # (size,)
            lane_ph = jnp.where(col_local < half, 0.0, _HALF_PI).astype(jnp.float32)
            self._pack = _pack_params(size)
            if self._pack is not None:
                L, pack = self._pack
                col = jnp.arange(L)
                grp = col // size
                fL = lane_f[col % size]
                self.fG = jnp.where(grp[None, :] == jnp.arange(pack)[:, None],
                                    fL[None, :], 0.0).astype(jnp.float32)       # (pack, L)
                self.phL = lane_ph[col % size].reshape(1, L).astype(jnp.float32)
            else:
                self.f_row = lane_f.reshape(1, size)
                self.ph_row = lane_ph.reshape(1, size)

        elif type == "learnable":
            if key is None:
                key = jax.random.PRNGKey(0)
            kw, kb = jax.random.split(key)
            # nn.Linear(1, size) default init: U(-1, 1) since fan_in = 1.
            self.weight = jax.random.uniform(kw, (size, 1), jnp.float32, -1.0, 1.0)
            self.bias = jax.random.uniform(kb, (size,), jnp.float32, -1.0, 1.0)
            w_scaled = (self.weight.reshape(-1) / float(size)).astype(jnp.float32)
            b = self.bias.astype(jnp.float32)
            self._pack = _pack_params(size)
            if self._pack is not None:
                L, pack = self._pack
                col = jnp.arange(L)
                grp = col // size
                wL = w_scaled[col % size]
                self.wG = jnp.where(grp[None, :] == jnp.arange(pack)[:, None],
                                    wL[None, :], 0.0).astype(jnp.float32)       # (pack, L)
                self.bL = b[col % size].reshape(1, L).astype(jnp.float32)
            else:
                self.w_row = w_scaled.reshape(1, size)
                self.b_row = b.reshape(1, size)

        elif type not in ("linear", "zero", "identity"):
            raise ValueError(f"Unknown positional embedding type: {type}")

    # -- XLA fallbacks (small N: pallas_call launch cost dominates a single tile) --
    def _sinusoidal_xla(self, x):
        half = self.size // 2
        ang = x.astype(jnp.float32)[:, None] * self.freqs_scaled.reshape(1, half)
        return jnp.concatenate([jnp.sin(ang), jnp.cos(ang)], axis=-1)

    def _learnable_xla(self, x):
        xf = x.astype(jnp.float32)[:, None] / float(self.size)
        return xf * self.weight.reshape(1, -1) + self.bias.reshape(1, -1)

    def __call__(self, x):
        n = x.shape[0]
        if self.type == "sinusoidal":
            if n < self.min_pallas_n:
                return self._sinusoidal_xla(x)
            if self._pack is not None:
                L, pack = self._pack
                return _run_packed(_sin_packed_kernel, x, self.fG, self.phL,
                                   self.size, L, pack)
            return _run_plain(_sin_plain_kernel, x, self.f_row, self.ph_row, self.size)
        if self.type == "learnable":
            if n < self.min_pallas_n:
                return self._learnable_xla(x)
            if self._pack is not None:
                L, pack = self._pack
                return _run_packed(_affine_packed_kernel, x, self.wG, self.bL,
                                   self.size, L, pack)
            return _run_plain(_affine_plain_kernel, x, self.w_row, self.b_row, self.size)
        # Trivial paths: an (N, 1) output block wastes 127/128 store lanes and pays
        # the full pallas_call launch/pipeline cost; XLA fuses these for free.
        if self.type == "linear":
            return (x / self.size * self.scale)[:, None]
        if self.type == "zero":
            return (x * 0)[:, None]
        if self.type == "identity":
            return x[:, None]
        raise ValueError(self.type)


# ----------------------------- references ----------------------------------- #

def _sinusoidal_ref(x, size, scale):
    half = size // 2
    emb = math.log(10000.0) / (half - 1)
    freqs = jnp.exp(-emb * jnp.arange(half, dtype=jnp.float32))
    ang = (x * scale)[:, None] * freqs[None, :]
    return jnp.concatenate([jnp.sin(ang), jnp.cos(ang)], axis=-1)


def _learnable_ref(x, w, b, size):
    return (x[:, None] / size) * w.reshape(1, -1) + b.reshape(1, -1)


# ----------------------------- main ------------------------------------------ #

if __name__ == "__main__":
    key = jax.random.PRNGKey(0)
    N, SIZE = 16, 32
    # positions / timesteps (float, as the toy diffusion code feeds timesteps)
    x = jax.random.uniform(key, (N,), jnp.float32, 0.0, 50.0)
    x_big = jax.random.uniform(jax.random.PRNGKey(2), (1001,), jnp.float32, 0.0, 50.0)

    # --- sinusoidal: lane-dense packed Pallas path (forced via min_pallas_n=0) ---
    pe_sin = PositionalEmbedding(SIZE, "sinusoidal", scale=1.0, min_pallas_n=0)
    out_sin = jax.block_until_ready(pe_sin(x))
    assert out_sin.shape == (N, SIZE)
    assert jnp.allclose(out_sin, _sinusoidal_ref(x, SIZE, 1.0), atol=1e-5)

    out_sin_big = jax.block_until_ready(pe_sin(x_big))
    assert out_sin_big.shape == (1001, SIZE)
    assert jnp.allclose(out_sin_big, _sinusoidal_ref(x_big, SIZE, 1.0), atol=1e-5)

    # --- learnable: lane-dense packed Pallas path ---
    pe_learn = PositionalEmbedding(SIZE, "learnable", key=jax.random.PRNGKey(1),
                                   min_pallas_n=0)
    out_learn = jax.block_until_ready(pe_learn(x))
    assert out_learn.shape == (N, SIZE)
    assert jnp.allclose(out_learn,
                        _learnable_ref(x, pe_learn.weight, pe_learn.bias, SIZE),
                        atol=1e-5)
    out_learn_big = jax.block_until_ready(pe_learn(x_big))
    assert out_learn_big.shape == (1001, SIZE)
    assert jnp.allclose(out_learn_big,
                        _learnable_ref(x_big, pe_learn.weight, pe_learn.bias, SIZE),
                        atol=1e-5)

    # --- plain (already lane-dense, size % 128 == 0) Pallas kernels ---
    pe_sin128 = PositionalEmbedding(128, "sinusoidal", scale=1.0, min_pallas_n=0)
    out_sin128 = jax.block_until_ready(pe_sin128(x_big))
    assert out_sin128.shape == (1001, 128)
    assert jnp.allclose(out_sin128, _sinusoidal_ref(x_big, 128, 1.0), atol=1e-5)

    pe_learn128 = PositionalEmbedding(128, "learnable", key=jax.random.PRNGKey(3),
                                      min_pallas_n=0)
    out_learn128 = jax.block_until_ready(pe_learn128(x_big))
    assert out_learn128.shape == (1001, 128)
    assert jnp.allclose(out_learn128,
                        _learnable_ref(x_big, pe_learn128.weight, pe_learn128.bias, 128),
                        atol=1e-5)

    # --- default dispatch: small N routes to fused XLA (same numerics) ---
    pe_sin_default = PositionalEmbedding(SIZE, "sinusoidal", scale=1.0)
    assert jnp.allclose(jax.block_until_ready(pe_sin_default(x)),
                        _sinusoidal_ref(x, SIZE, 1.0), atol=1e-5)

    # --- trivial paths (pure jnp, no Pallas by design) ---
    out_lin = jax.block_until_ready(PositionalEmbedding(SIZE, "linear", scale=2.0)(x))
    assert jnp.allclose(out_lin, (x / SIZE * 2.0)[:, None], atol=1e-6)
    out_zero = jax.block_until_ready(PositionalEmbedding(SIZE, "zero")(x))
    assert jnp.allclose(out_zero, jnp.zeros((N, 1)))
    out_id = jax.block_until_ready(PositionalEmbedding(SIZE, "identity")(x))
    assert jnp.allclose(out_id, x[:, None])

    print("KERNEL_OK")
</pallas_src>

<mosaic_0001>
module attributes {stable_mosaic.version = 11 : i64} {
  func.func @_sin_packed_kernel(%arg0: i32, %arg1: memref<8x4xf32, #tpu.memory_space<vmem>>, %arg2: memref<4x128xf32, #tpu.memory_space<vmem>>, %arg3: memref<1x128xf32, #tpu.memory_space<vmem>>, %arg4: memref<8x128xf32, #tpu.memory_space<vmem>>) attributes {dimension_semantics = [#tpu.dimension_semantics<parallel>], iteration_bounds = array<i64: 1>, scalar_prefetch = 0 : i64, scratch_operands = 0 : i64, tpu.core_type = #tpu.core_type<tc>, window_params = [{transform_indices = @transform_0, window_bounds = array<i64: 8, 4>}, {pipeline_mode = #tpu.pipeline_mode<synchronous>, transform_indices = @transform_1, window_bounds = array<i64: 4, 128>}, {pipeline_mode = #tpu.pipeline_mode<synchronous>, transform_indices = @transform_2, window_bounds = array<i64: 1, 128>}, {transform_indices = @transform_3, window_bounds = array<i64: 8, 128>}]} {
    %c0 = arith.constant 0 : index
    %c0_0 = arith.constant 0 : index
    %0 = vector.load %arg1[%c0, %c0_0] : memref<8x4xf32, #tpu.memory_space<vmem>>, vector<8x1xf32>
    %c0_1 = arith.constant 0 : index
    %c0_2 = arith.constant 0 : index
    %1 = vector.load %arg2[%c0_1, %c0_2] : memref<4x128xf32, #tpu.memory_space<vmem>>, vector<1x128xf32>
    %2 = vector.broadcast %0 : vector<8x1xf32> to vector<8x128xf32>
    %3 = vector.broadcast %1 : vector<1x128xf32> to vector<8x128xf32>
    %4 = arith.mulf %2, %3 : vector<8x128xf32>
    %c0_3 = arith.constant 0 : index
    %c1 = arith.constant 1 : index
    %5 = vector.load %arg1[%c0_3, %c1] : memref<8x4xf32, #tpu.memory_space<vmem>>, vector<8x1xf32>
    %c1_4 = arith.constant 1 : index
    %c0_5 = arith.constant 0 : index
    %6 = vector.load %arg2[%c1_4, %c0_5] : memref<4x128xf32, #tpu.memory_space<vmem>>, vector<1x128xf32>
    %7 = vector.broadcast %5 : vector<8x1xf32> to vector<8x128xf32>
    %8 = vector.broadcast %6 : vector<1x128xf32> to vector<8x128xf32>
    %9 = arith.mulf %7, %8 : vector<8x128xf32>
    %10 = arith.addf %4, %9 : vector<8x128xf32>
    %c0_6 = arith.constant 0 : index
    %c2 = arith.constant 2 : index
    %11 = vector.load %arg1[%c0_6, %c2] : memref<8x4xf32, #tpu.memory_space<vmem>>, vector<8x1xf32>
    %c2_7 = arith.constant 2 : index
    %c0_8 = arith.constant 0 : index
    %12 = vector.load %arg2[%c2_7, %c0_8] : memref<4x128xf32, #tpu.memory_space<vmem>>, vector<1x128xf32>
    %13 = vector.broadcast %11 : vector<8x1xf32> to vector<8x128xf32>
    %14 = vector.broadcast %12 : vector<1x128xf32> to vector<8x128xf32>
    %15 = arith.mulf %13, %14 : vector<8x128xf32>
    %16 = arith.addf %10, %15 : vector<8x128xf32>
    %c0_9 = arith.constant 0 : index
    %c3 = arith.constant 3 : index
    %17 = vector.load %arg1[%c0_9, %c3] : memref<8x4xf32, #tpu.memory_space<vmem>>, vector<8x1xf32>
    %c3_10 = arith.constant 3 : index
    %c0_11 = arith.constant 0 : index
    %18 = vector.load %arg2[%c3_10, %c0_11] : memref<4x128xf32, #tpu.memory_space<vmem>>, vector<1x128xf32>
    %19 = vector.broadcast %17 : vector<8x1xf32> to vector<8x128xf32>
    %20 = vector.broadcast %18 : vector<1x128xf32> to vector<8x128xf32>
    %21 = arith.mulf %19, %20 : vector<8x128xf32>
    %22 = arith.addf %16, %21 : vector<8x128xf32>
    %c0_12 = arith.constant 0 : index
    %c0_13 = arith.constant 0 : index
    %23 = vector.load %arg3[%c0_12, %c0_13] : memref<1x128xf32, #tpu.memory_space<vmem>>, vector<1x128xf32>
    %24 = vector.broadcast %23 : vector<1x128xf32> to vector<8x128xf32>
    %25 = arith.addf %22, %24 : vector<8x128xf32>
    %26 = math.sin %25 : vector<8x128xf32>
    %c0_14 = arith.constant 0 : index
    %c0_15 = arith.constant 0 : index
    %27 = vector.load %arg4[%c0_14, %c0_15] : memref<8x128xf32, #tpu.memory_space<vmem>>, vector<8x128xf32>
    tpu.vector_store %arg4[%c0_14, %c0_15], %26 {strides = array<i32>} : memref<8x128xf32, #tpu.memory_space<vmem>>, vector<8x128xf32>,
    return
  }
  func.func @transform_0(%arg0: i32) -> (i32, i32) {
    %c0_i32 = arith.constant 0 : i32
    %c0_i32_0 = arith.constant 0 : i32
    return %arg0, %c0_i32 : i32, i32
  }
  func.func @transform_1(%arg0: i32) -> (i32, i32) {
    %c0_i32 = arith.constant 0 : i32
    %c0_i32_0 = arith.constant 0 : i32
    %c0_i32_1 = arith.constant 0 : i32
    return %c0_i32, %c0_i32_0 : i32, i32
  }
  func.func @transform_2(%arg0: i32) -> (i32, i32) {
    %c0_i32 = arith.constant 0 : i32
    %c0_i32_0 = arith.constant 0 : i32
    %c0_i32_1 = arith.constant 0 : i32
    return %c0_i32, %c0_i32_0 : i32, i32
  }
  func.func @transform_3(%arg0: i32) -> (i32, i32) {
    %c0_i32 = arith.constant 0 : i32
    %c0_i32_0 = arith.constant 0 : i32
    return %arg0, %c0_i32 : i32, i32
  }
}

</mosaic_0001>

<bundles_post_ra>
// kernel: tpu_custom_call.1
= control target key start
LH: loop header
LB: loop body
LE: loop exit
PB: predicated region body
PF: predicated region fallthrough
CT: control target
= control target key end

     0   :  { %v275_v1 = vmov 0   ;;  %v276_v2 = vmov 2   ;;  %s386_s0 = inlined_call_operand.vmem [shape: f32[8,4], index: 0, kind: input, shape index: {}]   ;;  %s387_s1 = inlined_call_operand.vmem [shape: f32[4,128], index: 1, kind: input, shape index: {}]   ;;  %s388_s2 = inlined_call_operand.vmem [shape: f32[1,128], index: 2, kind: input, shape index: {}]   ;;  %s389_s3 = inlined_call_operand.hbm [shape: f32[8,128], index: 3, kind: output, shape index: {}]  }
   0x1   :  { %v15_v0 = vld [vmem:[%s386_s0] sm:$0xff]  ;;  %239 = vset.pattern.permute.xlu0 %v275_v1  ;;  %241 = vset.pattern.permute.xlu1 %v276_v2 }
   0x2   :  { %19 = vperm.xlu0 %239, %v15_v0   ;;  %34 = vperm.xlu1 %241, %v15_v0  }
   0x3   :  { %8 = vsyncpa [#allocation3], 0  ;;  %v277_v3 = vmov 1   ;;  %v278_v4 = vmov 3   ;;  %v244_v7 = vld [vmem:[%s387_s1] ss:$0 sm:$0xff] }
   0x4   :  { %v246_v8 = vld [vmem:[%s387_s1 + $0x1] ss:$0 sm:$0xff]  ;;  %v245_v9 = vld [vmem:[%s387_s1 + $0x2] ss:$0 sm:$0xff]  ;;  %v247_v10 = vld [vmem:[%s387_s1 + $0x3] ss:$0 sm:$0xff] }
   0x5   :  { %v248_v18 = vld [vmem:[%s388_s2] ss:$0 sm:$0xff]  ;;  %v279_v33 = vmov 2102212464   ;;  %v280_v35 = vmov 920167782  }
   0x6   :  { %v281_v38 = vmov 1326507024   ;;  %v282_v40 = vmov 683565275   ;;  %v283_v42 = vmov 2475754826  }
   0x7   :  { %v284_v45 = vmov 2131351028   ;;  %s285_s1 = smov [#allocation2]   ;;  %s216_s25 = sshll.u32 %s389_s3, 4  ;;  %s217_s25 = int_to_ptr.hbm [resolvable:$true] %s216_s25 }
   0x8   :  { %s214_s2 = sshll.u32 %s285_s1, 4  ;;  %s215_s2 = int_to_ptr.vmem [resolvable:$true] %s214_s2 }
   0xa   :  { %240 = vset.pattern.permute.xlu0 %v277_v3  ;;  %242 = vset.pattern.permute.xlu1 %v278_v4 }
   0xb   :  { %26 = vperm.xlu0 %240, %v15_v0   ;;  %42 = vperm.xlu1 %242, %v15_v0  }
  0x13   :  { %243 = vset.pattern.permute.xlu0 %v278_v4 }
  0x74   :  { %v20_v5 = vpop.permute.xlu0 %19  ;;  %v35_v6 = vpop.permute.xlu1 %34 }
  0x75   :  { %v23_v13 = vmul.f32 %v244_v7, %v20_v5  ;;  %v38_v15 = vmul.f32 %v245_v9, %v35_v6 }
  0x7d   :  { %v27_v11 = vpop.permute.xlu0 %26  ;;  %v43_v12 = vpop.permute.xlu1 %42 }
  0x7e   :  { %v30_v14 = vmul.f32 %v246_v8, %v27_v11  ;;  %v46_v17 = vmul.f32 %v247_v10, %v43_v12 }
  0x80   :  { %v31_v16 = vadd.f32 %v30_v14, %v23_v13 }
  0x82   :  { %v39_v19 = vadd.f32 %v38_v15, %v31_v16 }
  0x84   :  { %v47_v20 = vadd.f32 %v46_v17, %v39_v19 }
  0x86   :  { %v325_v21 = vadd.f32 %v248_v18, %v47_v20 }
  0x88   :  { %v56_v22 = vand.u32 2139095040, %v325_v21  ;;  %v53_v25 = vand.u32 2147483647, %v325_v21  ;;  %vm55_vm12 = vcmp.lt.s32.totalorder %v325_v21, 0 }
  0x8a   :  { %v57_v23 = vshrl.u32 %v56_v22, 23  ;;  %v60_v27 = vand.u32 8388607, %v53_v25  ;;  %vm54_vm13 = vcmp.le.f32.partialorder %v53_v25, 0.7853982 }
  0x8c   :  { %v225_v24 = vadd.s32 4294967169, %v57_v23  ;;  %v61_v31 = vor.u32 8388608, %v60_v27 }
  0x8e   :  { %v63_v26 = vadd.s32 1, %v225_v24  ;;  %v340_v52 = vshll.u32 %v61_v31, 8 }
  0x90   :  { %vm64_vm0 = vcmp.gt.s32.totalorder %v63_v26, 0  ;;  %v102_v62 = vand.u32 65535, %v340_v52  ;;  %v103_v0 = vshrl.u32 %v340_v52, 16 }
  0x91   :  { %v65_v28 = vsel %vm64_vm0, %v63_v26, 0 }
  0x92   :  { %v67_v29 = vand.u32 31, %v65_v28  ;;  %v333_v32 = vshrl.u32 %v65_v28, 5 }
  0x94   :  { %v331_v30 = vsub.s32 32, %v67_v29  ;;  %v79_v34 = vshll.u32 %v279_v33, %v67_v29  ;;  %v82_v36 = vshll.u32 %v280_v35, %v67_v29  ;;  %v70_v41 = vshll.u32 %v282_v40, %v67_v29 }
  0x95   :  { %v73_v44 = vshll.u32 %v283_v42, %v67_v29  ;;  %v76_v47 = vshll.u32 %v284_v45, %v67_v29  ;;  %vm88_vm1 = vcmp.lt.s32.totalorder %v333_v32, 4  ;;  %vm85_vm2 = vcmp.lt.s32.totalorder %v333_v32, 1 }
  0x96   :  { %v80_v37 = vshrl.u32 %v280_v35, %v331_v30  ;;  %v83_v39 = vshrl.u32 %v281_v38, %v331_v30  ;;  %v71_v43 = vshrl.u32 %v283_v42, %v331_v30  ;;  %v74_v46 = vshrl.u32 %v284_v45, %v331_v30 }
  0x97   :  { %v77_v48 = vshrl.u32 %v279_v33, %v331_v30  ;;  %vm87_vm3 = vcmp.lt.s32.totalorder %v333_v32, 3  ;;  %vm86_vm4 = vcmp.lt.s32.totalorder %v333_v32, 2  ;;  %v69_v26 = vshrl.u32 %v282_v40, %v331_v30 }
  0x98   :  { %v81_v49 = vor.u32 %v80_v37, %v79_v34  ;;  %v84_v50 = vor.u32 %v83_v39, %v82_v36  ;;  %v72_v51 = vor.u32 %v71_v43, %v70_v41  ;;  %v75_v53 = vor.u32 %v74_v46, %v73_v44 }
  0x99   :  { %v78_v54 = vor.u32 %v77_v48, %v76_v47 }
  0x9a   :  { %v94_v55 = vsel %vm88_vm1, %v81_v49, 920167782  ;;  %v98_v56 = vsel %vm88_vm1, %v84_v50, 1326507024  ;;  %v93_v57 = vsel %vm85_vm2, %v72_v51, %v75_v53  ;;  %v89_v34 = vsel %vm85_vm2, %v69_v26, %v72_v51 }
  0x9b   :  { %v95_v58 = vsel %vm87_vm3, %v78_v54, %v94_v55  ;;  %v97_v59 = vsel %vm85_vm2, %v75_v53, %v78_v54  ;;  %v99_v61 = vsel %vm87_vm3, %v81_v49, %v98_v56  ;;  %v90_v22 = vsel %vm88_vm1, %v78_v54, 2102212464 }
  0x9c   :  { %v96_v60 = vsel %vm86_vm4, %v93_v57, %v95_v58  ;;  %v100_v63 = vsel %vm86_vm4, %v97_v59, %v99_v61  ;;  %v91_v35 = vsel %vm87_vm3, %v75_v53, %v90_v22  ;;  %vm196_vm1 = vweird.f32 %v325_v21 }
  0x9d   :  { %v126_v2 = vand.u32 65535, %v96_v60  ;;  %v127_v3 = vshrl.u32 %v96_v60, 16  ;;  %v104_v4 = vand.u32 65535, %v100_v63  ;;  %v105_v5 = vshrl.u32 %v100_v63, 16 }
  0x9e   :  { %v92_v40 = vsel %vm86_vm4, %v89_v34, %v91_v35 }
  0x9f   :  { %v129_v6 = vmul.u32 %v127_v3, %v102_v62  ;;  %v130_v7 = vmul.u32 %v126_v2, %v103_v0  ;;  %v107_v8 = vmul.u32 %v105_v5, %v102_v62  ;;  %v108_v9 = vmul.u32 %v104_v4, %v103_v0 }
  0xa0   :  { %v128_v10 = vmul.u32 %v126_v2, %v102_v62  ;;  %v106_v12 = vmul.u32 %v104_v4, %v102_v62  ;;  %v131_v14 = vmul.u32 %v127_v3, %v103_v0  ;;  %v109_v15 = vmul.u32 %v105_v5, %v103_v0 }
  0xa1   :  { %v132_v11 = vshll.u32 %v129_v6, 16  ;;  %v110_v13 = vshll.u32 %v107_v8, 16  ;;  %v134_v16 = vshll.u32 %v130_v7, 16  ;;  %v112_v18 = vshll.u32 %v108_v9, 16 }
  0xa2   :  { %v133_v31 = vshrl.u32 %v129_v6, 16  ;;  %v111_v36 = vshrl.u32 %v107_v8, 16  ;;  %v135_v38 = vshrl.u32 %v130_v7, 16  ;;  %v113_v41 = vshrl.u32 %v108_v9, 16 }
  0xa3   :  { %vm136_vm5 = vc.u32 %v128_v10, %v132_v11  ;;  %v138_v17 = vadd.s32 %v132_v11, %v128_v10  ;;  %vm114_vm6 = vc.u32 %v106_v12, %v110_v13  ;;  %v116_v19 = vadd.s32 %v110_v13, %v106_v12 }
  0xa4   :  { %v137_v20 = vsel %vm136_vm5, 1, %v275_v1  ;;  %v115_v23 = vsel %vm114_vm6, 1, %v275_v1  ;;  %v146_v45 = vmul.u32 %v340_v52, %v92_v40 }
  0xa5   :  { %v139_v24 = vadd.s32 %v137_v20, %v131_v14  ;;  %vm140_vm7 = vc.u32 %v138_v17, %v134_v16  ;;  %v117_v27 = vadd.s32 %v115_v23, %v109_v15  ;;  %vm118_vm8 = vc.u32 %v116_v19, %v112_v18 }
  0xa6   :  { %v141_v28 = vsel %vm140_vm7, 1, %v275_v1  ;;  %v119_v29 = vsel %vm118_vm8, 1, %v275_v1  ;;  %v142_v1 = vadd.s32 %v138_v17, %v134_v16 }
  0xa7   :  { %v143_v33 = vadd.s32 %v141_v28, %v139_v24  ;;  %v121_v37 = vadd.s32 %v119_v29, %v117_v27 }
  0xa9   :  { %v144_v39 = vadd.s32 %v143_v33, %v133_v31  ;;  %v122_v30 = vadd.s32 %v121_v37, %v111_v36 }
  0xab   :  { %v145_v42 = vadd.s32 %v144_v39, %v135_v38  ;;  %v123_v43 = vadd.s32 %v122_v30, %v113_v41 }
  0xad   :  { %v149_v44 = vadd.s32 1, %v145_v42  ;;  %vm148_vm9 = vc.u32 %v123_v43, %v142_v1  ;;  %v147_v57 = vadd.s32 %v142_v1, %v123_v43 }
  0xaf   :  { %v150_v46 = vsel %vm148_vm9, %v149_v44, %v145_v42 }
  0xb0   :  { %v151_v47 = vadd.s32 %v150_v46, %v146_v45 }
  0xb2   :  { %v152_v48 = vadd.s32 536870912, %v151_v47 }
  0xb4   :  { %v153_v49 = vshrl.u32 %v152_v48, 30 }
  0xb6   :  { %v154_v50 = vshll.u32 %v153_v49, 30  ;;  %v177_v7 = vsub.s32 4, %v153_v49 }
  0xb8   :  { %v155_v51 = vsub.s32 %v151_v47, %v154_v50  ;;  %v178_v12 = vsel %vm55_vm12, %v177_v7, %v153_v49 }
  0xb9   :  { %v180_v15 = vsel %vm54_vm13, 0, %v178_v12 }
  0xba   :  { %vm156_vm10 = vcmp.lt.s32.totalorder %v155_v51, 0  ;;  %v157_v53 = vsub.s32 0, %v155_v51  ;;  %v197_v20 = vadd.s32 3, %v180_v15 }
  0xbc   :  { %v158_v54 = vsel %vm156_vm10, %v157_v53, %v155_v51  ;;  %v198_v26 = vand.u32 3, %v197_v20 }
  0xbd   :  { %v159_v55 = vclz %v158_v54 }
  0xbe   :  { %vm200_vm14 = vcmp.eq.s32.totalorder %v198_v26, 0  ;;  %vm203_vm15 = vcmp.eq.s32.totalorder %v198_v26, 2  ;;  %vm199_vm0 = vcmp.lt.s32.totalorder %v198_v26, 2 }
  0xbf   :  { %v226_v56 = vadd.s32 4294967294, %v159_v55 }
  0xc1   :  { %vm227_vm11 = vcmp.lt.s32.totalorder %v226_v56, 0 }
  0xc2   :  { %v162_v32 = vsel %vm227_vm11, 0, %v226_v56 }
  0xc3   :  { %v163_v58 = vsub.s32 32, %v162_v32  ;;  %v167_v59 = vsub.s32 4294967266, %v162_v32  ;;  %v164_v60 = vshll.u32 %v155_v51, %v162_v32 }
  0xc5   :  { %v165_v61 = vshrl.u32 %v147_v57, %v163_v58  ;;  %v168_v52 = vadd.s32 127, %v167_v59 }
  0xc7   :  { %v166_v62 = vor.u32 %v165_v61, %v164_v60  ;;  %v169_v63 = vshll.u32 %v168_v52, 23 }
  0xc9   :  { %v170_v0 = vor.u32 4788187, %v169_v63  ;;  %v173_v3 = vcvt.s32.f32 %v166_v62 }
  0xcb   :  { %v171_v2 = vand.u32 2147483647, %v170_v0 }
  0xcd   :  { %v174_v4 = vmul.f32 %v173_v3, %v171_v2 }
  0xcf   :  { %v175_v5 = vxor.u32 2147483648, %v174_v4 }
  0xd1   :  { %v176_v6 = vsel %vm55_vm12, %v175_v5, %v174_v4 }
  0xd2   :  { %v179_v8 = vsel %vm54_vm13, %v325_v21, %v176_v6 }
  0xd3   :  { %v181_v9 = vmul.f32 %v179_v8, %v179_v8 }
  0xd5   :  { %v182_v10 = vmul.f32 -0.001358992, %v181_v9  ;;  %v189_v11 = vmul.f32 -0.00019511016, %v181_v9 }
  0xd7   :  { %v183_v13 = vadd.f32 0.041655596, %v182_v10  ;;  %v190_v14 = vadd.f32 0.008332121, %v189_v11 }
  0xd9   :  { %v184_v16 = vmul.f32 %v183_v13, %v181_v9  ;;  %v191_v17 = vmul.f32 %v190_v14, %v181_v9 }
  0xdb   :  { %v185_v18 = vadd.f32 -0.4999988, %v184_v16  ;;  %v192_v19 = vadd.f32 -0.16666654, %v191_v17 }
  0xdd   :  { %v186_v22 = vmul.f32 %v185_v18, %v181_v9  ;;  %v193_v23 = vmul.f32 %v192_v19, %v181_v9 }
  0xdf   :  { %v187_v24 = vadd.f32 1.0, %v186_v22  ;;  %v194_v25 = vadd.f32 1.0, %v193_v23 }
  0xe1   :  { %v195_v27 = vmul.f32 %v194_v25, %v179_v8  ;;  %v204_v28 = vxor.u32 2147483648, %v187_v24 }
  0xe3   :  { %v201_v29 = vxor.u32 2147483648, %v195_v27  ;;  %v205_v33 = vsel %vm203_vm15, %v204_v28, %v195_v27 }
  0xe5   :  { %v202_v31 = vsel %vm200_vm14, %v187_v24, %v201_v29 }
  0xe6   :  { %v206_v34 = vsel %vm199_vm0, %v202_v31, %v205_v33 }
  0xe7   :  { %v207_v35 = vsel %vm196_vm1, nan, %v206_v34 }
  0xe8   :  { %208 = vst [vmem:[#allocation2] sm:$0xff] %v207_v35 }
  0xe9   :  { %219 = dma.vmem_to_hbm [thread:$0]  %s215_s2, 128, %s217_s25, [#allocation3]  }
  0xea   :  { %273 = dma.done.wait [#allocation3], 128  }
  0xeb   :  { %274 = vsyncadd [#allocation3], 4294967168 }
  0xec   :  { %224 = vsyncpa [#allocation3], 1 }

</bundles_post_ra>
